<compile_context>
chip_gen: v6e
topology: v6e:2x2x1
jax: 0.10.0
libtpu: 0.0.40
codegen_flags: <defaults>
</compile_context>

<pallas_src>
from functools import partial

import jax
import jax.numpy as jnp
import numpy as np
from jax import lax
from jax.experimental import pallas as pl
from jax.experimental.pallas import tpu as pltpu

BN_EPS = 1e-5


def _round_up(a, b):
    return (a + b - 1) // b * b


# ---------------------------------------------------------------------------
# Pass 1: tiled matmul + per-tile per-channel partial BN statistics
# ---------------------------------------------------------------------------
def _matmul_stats_kernel(p_ref, w_ref, y_ref, sum_ref, ssq_ref):
    # p: (TM, Kpad)  w: (Kpad, Cpad)  y: (TM, Cpad)  sum/ssq: (8, Cpad)
    y = jnp.dot(p_ref[...], w_ref[...], preferred_element_type=jnp.float32)
    y_ref[...] = y
    # Per-tile partial reductions of the already-resident (TM, Cpad) tile —
    # keeps the cross-sublane reduction small and off the full-array path.
    s = jnp.sum(y, axis=0, keepdims=True)          # (1, Cpad)
    q = jnp.sum(y * y, axis=0, keepdims=True)      # (1, Cpad)
    # Broadcast into an (8, Cpad) tile so the output block stays (8, 128)-legal.
    sum_ref[...] = jnp.broadcast_to(s, sum_ref.shape)
    ssq_ref[...] = jnp.broadcast_to(q, ssq_ref.shape)


# ---------------------------------------------------------------------------
# Pass 2: fused scale/shift (BN affine) + ReLU, lane-dense stores, in-place
# ---------------------------------------------------------------------------
def _bn_relu_kernel(y_ref, scale_ref, shift_ref, o_ref):
    y = y_ref[...] * scale_ref[...] + shift_ref[...]
    o_ref[...] = jnp.maximum(y, 0.0).astype(o_ref.dtype)


def _im2col(x_nchw, kh, kw, stride, padding):
    """NCHW -> (N*Ho*Wo, C*kh*kw) patch matrix, channel-major / kernel-minor."""
    N, C, H, W = x_nchw.shape
    xp = jnp.pad(x_nchw, ((0, 0), (0, 0), (padding, padding), (padding, padding)))
    Ho = (H + 2 * padding - kh) // stride + 1
    Wo = (W + 2 * padding - kw) // stride + 1
    patches = []
    for i in range(kh):
        for j in range(kw):
            patches.append(
                xp[:, :, i:i + stride * Ho:stride, j:j + stride * Wo:stride]
            )  # (N, C, Ho, Wo)
    p = jnp.stack(patches, axis=2)                 # (N, C, kh*kw, Ho, Wo)
    p = p.transpose(0, 3, 4, 1, 2)                 # (N, Ho, Wo, C, kh*kw)
    p = p.reshape(N * Ho * Wo, C * kh * kw)        # (M, K)
    return p, Ho, Wo


@partial(jax.jit, static_argnames=("stride", "padding", "tile_m", "use_bf16"))
def convlayer_forward(x_nchw, weight, bias, gamma, beta, *, stride, padding,
                      tile_m=512, use_bf16=False):
    """Conv2d -> BatchNorm2d(train-mode stats) -> ReLU, matching PyTorch NCHW.

    `bias` is accepted for API parity with nn.Conv2d but is mathematically
    cancelled by the train-mode BN mean subtraction, so it is not used.
    """
    del bias  # exactly cancelled by BN mean subtraction (dead work)
    assert tile_m % 8 == 0, "tile_m must be a multiple of 8 (sublane tile)"

    N, C_in, H, W = x_nchw.shape
    C_out, _, kh, kw = weight.shape

    patches, Ho, Wo = _im2col(x_nchw, kh, kw, stride, padding)   # (M, K)
    M, K = patches.shape

    # --- padding for lane-dense / tile-friendly shapes -----------------------
    # C_out -> multiple of 128: unmasked lane-dense stores (biggest store lever).
    Cpad = _round_up(max(C_out, 128), 128)
    # K -> multiple of 8 only (padding K all the way to 128 would bloat the
    # HBM-bound patch-matrix traffic; the block spans the full K dim anyway).
    Kpad = _round_up(K, 8)
    TM = min(tile_m, _round_up(M, 8))
    Mpad = _round_up(M, TM)
    num_tiles = Mpad // TM

    p_pad = jnp.pad(patches, ((0, Mpad - M), (0, Kpad - K)))
    w_mat = weight.reshape(C_out, C_in * kh * kw).T              # (K, C_out)
    w_pad = jnp.pad(w_mat, ((0, Kpad - K), (0, Cpad - C_out)))
    gamma_pad = jnp.pad(gamma, (0, Cpad - C_out))
    beta_pad = jnp.pad(beta, (0, Cpad - C_out))

    if use_bf16:   # v6e/v7x fast path: bf16 MXU operands, f32 accumulate.
        p_pad = p_pad.astype(jnp.bfloat16)
        w_pad = w_pad.astype(jnp.bfloat16)

    # --- pass 1: Y = P @ W, per-tile partial (sum, sumsq) --------------------
    y_flat, psum, pssq = pl.pallas_call(
        _matmul_stats_kernel,
        out_shape=(
            jax.ShapeDtypeStruct((Mpad, Cpad), jnp.float32),
            jax.ShapeDtypeStruct((num_tiles * 8, Cpad), jnp.float32),
            jax.ShapeDtypeStruct((num_tiles * 8, Cpad), jnp.float32),
        ),
        grid=(num_tiles,),
        in_specs=[
            pl.BlockSpec((TM, Kpad), lambda m: (m, 0)),
            pl.BlockSpec((Kpad, Cpad), lambda m: (0, 0)),
        ],
        out_specs=(
            pl.BlockSpec((TM, Cpad), lambda m: (m, 0)),
            pl.BlockSpec((8, Cpad), lambda m: (m, 0)),
            pl.BlockSpec((8, Cpad), lambda m: (m, 0)),
        ),
        compiler_params=pltpu.CompilerParams(dimension_semantics=("parallel",)),
    )(p_pad, w_pad)

    # --- tiny JAX glue: finalize BN stats, fold gamma/beta into scale/shift --
    # Zero-padded rows contribute 0 to both sums, so divide by the TRUE M.
    total_sum = psum.reshape(num_tiles, 8, Cpad)[:, 0, :].sum(axis=0)   # (Cpad,)
    total_ssq = pssq.reshape(num_tiles, 8, Cpad)[:, 0, :].sum(axis=0)   # (Cpad,)
    mean = total_sum / M
    var = jnp.maximum(total_ssq / M - mean * mean, 0.0)
    inv_std = lax.rsqrt(var + BN_EPS)
    scale = gamma_pad * inv_std                     # (Cpad,)
    shift = beta_pad - mean * scale                 # (Cpad,)
    scale_row = scale.reshape(1, Cpad)
    shift_row = shift.reshape(1, Cpad)

    # --- pass 2: normalize + affine + ReLU, in-place on Y --------------------
    out_flat = pl.pallas_call(
        _bn_relu_kernel,
        out_shape=jax.ShapeDtypeStruct((Mpad, Cpad), jnp.float32),
        grid=(num_tiles,),
        in_specs=[
            pl.BlockSpec((TM, Cpad), lambda m: (m, 0)),
            pl.BlockSpec((1, Cpad), lambda m: (0, 0)),
            pl.BlockSpec((1, Cpad), lambda m: (0, 0)),
        ],
        out_specs=pl.BlockSpec((TM, Cpad), lambda m: (m, 0)),
        input_output_aliases={0: 0},   # reuse Y's HBM buffer for the output
        compiler_params=pltpu.CompilerParams(dimension_semantics=("parallel",)),
    )(y_flat, scale_row, shift_row)

    # (Mpad, Cpad) -> (M, C_out) -> (N, Ho, Wo, C_out) -> NCHW
    out = out_flat[:M, :C_out].reshape(N, Ho, Wo, C_out).transpose(0, 3, 1, 2)
    return out


def _reference(x, weight, bias, gamma, beta, stride, padding):
    """Pure-JAX reference: conv2d (+bias) + train-mode BN + ReLU (NCHW)."""
    y = lax.conv_general_dilated(
        x, weight, window_strides=(stride, stride),
        padding=[(padding, padding), (padding, padding)],
        dimension_numbers=("NCHW", "OIHW", "NCHW"),
    ) + bias.reshape(1, -1, 1, 1)
    mean = jnp.mean(y, axis=(0, 2, 3), keepdims=True)
    var = jnp.mean((y - mean) ** 2, axis=(0, 2, 3), keepdims=True)
    y = (y - mean) * lax.rsqrt(var + BN_EPS)
    y = y * gamma.reshape(1, -1, 1, 1) + beta.reshape(1, -1, 1, 1)
    return jnp.maximum(y, 0.0)


if __name__ == "__main__":
    # Convlayer(in_channel=4, out_channel=8, kernal_size=3, stride=1, padding=1)
    in_channel, out_channel, ksize, stride, padding = 4, 8, 3, 1, 1
    N, H, W = 2, 16, 16

    key = jax.random.PRNGKey(0)
    kx, kw_, kb, kg, kbe = jax.random.split(key, 5)

    x = jax.random.normal(kx, (N, in_channel, H, W), dtype=jnp.float32)
    weight = jax.random.normal(kw_, (out_channel, in_channel, ksize, ksize),
                               dtype=jnp.float32) * 0.1
    bias = jax.random.normal(kb, (out_channel,), dtype=jnp.float32) * 0.1
    gamma = 1.0 + 0.1 * jax.random.normal(kg, (out_channel,), dtype=jnp.float32)
    beta = 0.1 * jax.random.normal(kbe, (out_channel,), dtype=jnp.float32)

    ref = jax.block_until_ready(
        _reference(x, weight, bias, gamma, beta, stride, padding))

    # f32 MXU path; tile_m=128 -> 4 row tiles (exercises cross-tile BN stats).
    out = convlayer_forward(x, weight, bias, gamma, beta,
                            stride=stride, padding=padding,
                            tile_m=128, use_bf16=False)
    out = jax.block_until_ready(out)
    assert out.shape == (N, out_channel, H, W), out.shape
    np.testing.assert_allclose(np.asarray(out), np.asarray(ref),
                               atol=1e-4, rtol=1e-4)

    # bf16 MXU operands (v6e/v7x fast path), f32 accumulation / BN math.
    out_bf16 = jax.block_until_ready(
        convlayer_forward(x, weight, bias, gamma, beta,
                          stride=stride, padding=padding,
                          tile_m=128, use_bf16=True))
    np.testing.assert_allclose(np.asarray(out_bf16), np.asarray(ref),
                               atol=5e-2, rtol=5e-2)

    # A strided config to exercise a different M / grid shape.
    ref_s2 = jax.block_until_ready(_reference(x, weight, bias, gamma, beta, 2, 1))
    out_s2 = jax.block_until_ready(
        convlayer_forward(x, weight, bias, gamma, beta,
                          stride=2, padding=1, tile_m=128, use_bf16=False))
    np.testing.assert_allclose(np.asarray(out_s2), np.asarray(ref_s2),
                               atol=1e-4, rtol=1e-4)

    print("KERNEL_OK")
</pallas_src>

<mosaic_0001>
module attributes {stable_mosaic.version = 11 : i64} {
  func.func @_matmul_stats_kernel(%arg0: i32, %arg1: memref<128x40xf32, #tpu.memory_space<vmem>>, %arg2: memref<40x128xf32, #tpu.memory_space<vmem>>, %arg3: memref<128x128xf32, #tpu.memory_space<vmem>>, %arg4: memref<8x128xf32, #tpu.memory_space<vmem>>, %arg5: memref<8x128xf32, #tpu.memory_space<vmem>>) attributes {dimension_semantics = [#tpu.dimension_semantics<parallel>], iteration_bounds = array<i64: 4>, scalar_prefetch = 0 : i64, scratch_operands = 0 : i64, tpu.core_type = #tpu.core_type<tc>, window_params = [{transform_indices = @transform_0, window_bounds = array<i64: 128, 40>}, {pipeline_mode = #tpu.pipeline_mode<synchronous>, transform_indices = @transform_1, window_bounds = array<i64: 40, 128>}, {transform_indices = @transform_2, window_bounds = array<i64: 128, 128>}, {transform_indices = @transform_3, window_bounds = array<i64: 8, 128>}, {transform_indices = @transform_4, window_bounds = array<i64: 8, 128>}]} {
    %c0 = arith.constant 0 : index
    %c0_0 = arith.constant 0 : index
    %0 = vector.load %arg1[%c0, %c0_0] : memref<128x40xf32, #tpu.memory_space<vmem>>, vector<128x40xf32>
    %c0_1 = arith.constant 0 : index
    %c0_2 = arith.constant 0 : index
    %1 = vector.load %arg2[%c0_1, %c0_2] : memref<40x128xf32, #tpu.memory_space<vmem>>, vector<40x128xf32>
    %cst = arith.constant dense<0.000000e+00> : vector<128x128xf32>
    %2 = tpu.matmul %0, %1, %cst {dimension_numbers = #tpu.dot_dimension_numbers<[1], [0], [0], [1], [0, 0, 1, 1], [], []>} : vector<128x40xf32>, vector<40x128xf32>, vector<128x128xf32> -> vector<128x128xf32>
    %c0_3 = arith.constant 0 : index
    %c0_4 = arith.constant 0 : index
    %3 = vector.load %arg3[%c0_3, %c0_4] : memref<128x128xf32, #tpu.memory_space<vmem>>, vector<128x128xf32>
    tpu.vector_store %arg3[%c0_3, %c0_4], %2 {strides = array<i32>} : memref<128x128xf32, #tpu.memory_space<vmem>>, vector<128x128xf32>,
    %cst_5 = arith.constant dense<0.000000e+00> : vector<128xf32>
    %4 = vector.multi_reduction <add>, %2, %cst_5 [0] : vector<128x128xf32> to vector<128xf32>
    %5 = vector.shape_cast %4 : vector<128xf32> to vector<1x128xf32>
    %6 = arith.mulf %2, %2 : vector<128x128xf32>
    %cst_6 = arith.constant dense<0.000000e+00> : vector<128xf32>
    %7 = vector.multi_reduction <add>, %6, %cst_6 [0] : vector<128x128xf32> to vector<128xf32>
    %8 = vector.shape_cast %7 : vector<128xf32> to vector<1x128xf32>
    %9 = vector.shape_cast %5 : vector<1x128xf32> to vector<1x128xf32>
    %10 = vector.broadcast %9 : vector<1x128xf32> to vector<8x128xf32>
    %c0_7 = arith.constant 0 : index
    %c0_8 = arith.constant 0 : index
    %11 = vector.load %arg4[%c0_7, %c0_8] : memref<8x128xf32, #tpu.memory_space<vmem>>, vector<8x128xf32>
    tpu.vector_store %arg4[%c0_7, %c0_8], %10 {strides = array<i32>} : memref<8x128xf32, #tpu.memory_space<vmem>>, vector<8x128xf32>,
    %12 = vector.shape_cast %8 : vector<1x128xf32> to vector<1x128xf32>
    %13 = vector.broadcast %12 : vector<1x128xf32> to vector<8x128xf32>
    %c0_9 = arith.constant 0 : index
    %c0_10 = arith.constant 0 : index
    %14 = vector.load %arg5[%c0_9, %c0_10] : memref<8x128xf32, #tpu.memory_space<vmem>>, vector<8x128xf32>
    tpu.vector_store %arg5[%c0_9, %c0_10], %13 {strides = array<i32>} : memref<8x128xf32, #tpu.memory_space<vmem>>, vector<8x128xf32>,
    return
  }
  func.func @transform_0(%arg0: i32) -> (i32, i32) {
    %c0_i32 = arith.constant 0 : i32
    %c0_i32_0 = arith.constant 0 : i32
    return %arg0, %c0_i32 : i32, i32
  }
  func.func @transform_1(%arg0: i32) -> (i32, i32) {
    %c0_i32 = arith.constant 0 : i32
    %c0_i32_0 = arith.constant 0 : i32
    %c0_i32_1 = arith.constant 0 : i32
    return %c0_i32, %c0_i32_0 : i32, i32
  }
  func.func @transform_2(%arg0: i32) -> (i32, i32) {
    %c0_i32 = arith.constant 0 : i32
    %c0_i32_0 = arith.constant 0 : i32
    return %arg0, %c0_i32 : i32, i32
  }
  func.func @transform_3(%arg0: i32) -> (i32, i32) {
    %c0_i32 = arith.constant 0 : i32
    %c0_i32_0 = arith.constant 0 : i32
    return %arg0, %c0_i32 : i32, i32
  }
  func.func @transform_4(%arg0: i32) -> (i32, i32) {
    %c0_i32 = arith.constant 0 : i32
    %c0_i32_0 = arith.constant 0 : i32
    return %arg0, %c0_i32 : i32, i32
  }
}

module attributes {stable_mosaic.version = 11 : i64} {
  func.func @_bn_relu_kernel(%arg0: i32, %arg1: memref<128x128xf32, #tpu.memory_space<vmem>>, %arg2: memref<1x128xf32, #tpu.memory_space<vmem>>, %arg3: memref<1x128xf32, #tpu.memory_space<vmem>>, %arg4: memref<128x128xf32, #tpu.memory_space<vmem>>) attributes {dimension_semantics = [#tpu.dimension_semantics<parallel>], iteration_bounds = array<i64: 4>, scalar_prefetch = 0 : i64, scratch_operands = 0 : i64, tpu.core_type = #tpu.core_type<tc>, window_params = [{transform_indices = @transform_0, window_bounds = array<i64: 128, 128>}, {pipeline_mode = #tpu.pipeline_mode<synchronous>, transform_indices = @transform_1, window_bounds = array<i64: 1, 128>}, {pipeline_mode = #tpu.pipeline_mode<synchronous>, transform_indices = @transform_2, window_bounds = array<i64: 1, 128>}, {transform_indices = @transform_3, window_bounds = array<i64: 128, 128>}]} {
    %c0 = arith.constant 0 : index
    %c0_0 = arith.constant 0 : index
    %0 = vector.load %arg1[%c0, %c0_0] : memref<128x128xf32, #tpu.memory_space<vmem>>, vector<128x128xf32>
    %c0_1 = arith.constant 0 : index
    %c0_2 = arith.constant 0 : index
    %1 = vector.load %arg2[%c0_1, %c0_2] : memref<1x128xf32, #tpu.memory_space<vmem>>, vector<1x128xf32>
    %2 = vector.broadcast %1 : vector<1x128xf32> to vector<128x128xf32>
    %3 = arith.mulf %0, %2 : vector<128x128xf32>
    %c0_3 = arith.constant 0 : index
    %c0_4 = arith.constant 0 : index
    %4 = vector.load %arg3[%c0_3, %c0_4] : memref<1x128xf32, #tpu.memory_space<vmem>>, vector<1x128xf32>
    %5 = vector.broadcast %4 : vector<1x128xf32> to vector<128x128xf32>
    %6 = arith.addf %3, %5 : vector<128x128xf32>
    %cst = arith.constant 0.000000e+00 : f32
    %7 = vector.broadcast %cst : f32 to vector<128x128xf32>
    %8 = arith.maximumf %6, %7 : vector<128x128xf32>
    %c0_5 = arith.constant 0 : index
    %c0_6 = arith.constant 0 : index
    %9 = vector.load %arg4[%c0_5, %c0_6] : memref<128x128xf32, #tpu.memory_space<vmem>>, vector<128x128xf32>
    tpu.vector_store %arg4[%c0_5, %c0_6], %8 {strides = array<i32>} : memref<128x128xf32, #tpu.memory_space<vmem>>, vector<128x128xf32>,
    return
  }
  func.func @transform_0(%arg0: i32) -> (i32, i32) {
    %c0_i32 = arith.constant 0 : i32
    %c0_i32_0 = arith.constant 0 : i32
    return %arg0, %c0_i32 : i32, i32
  }
  func.func @transform_1(%arg0: i32) -> (i32, i32) {
    %c0_i32 = arith.constant 0 : i32
    %c0_i32_0 = arith.constant 0 : i32
    %c0_i32_1 = arith.constant 0 : i32
    return %c0_i32, %c0_i32_0 : i32, i32
  }
  func.func @transform_2(%arg0: i32) -> (i32, i32) {
    %c0_i32 = arith.constant 0 : i32
    %c0_i32_0 = arith.constant 0 : i32
    %c0_i32_1 = arith.constant 0 : i32
    return %c0_i32, %c0_i32_0 : i32, i32
  }
  func.func @transform_3(%arg0: i32) -> (i32, i32) {
    %c0_i32 = arith.constant 0 : i32
    %c0_i32_0 = arith.constant 0 : i32
    return %arg0, %c0_i32 : i32, i32
  }
}

</mosaic_0001>

<bundles_post_ra>
// kernel: convlayer_forward.3
= control target key start
LH: loop header
LB: loop body
LE: loop exit
PB: predicated region body
PF: predicated region fallthrough
CT: control target
= control target key end

     0   :  { %s373_s12 = smov 0   ;;  %s439_s0 = inlined_call_operand.vmem [shape: f32[512,128], index: 0, kind: input, shape index: {}, may-alias: {0,3}]   ;;  %s440_s1 = inlined_call_operand.vmem [shape: f32[1,128], index: 1, kind: input, shape index: {}]   ;;  %s441_s2 = inlined_call_operand.vmem [shape: f32[1,128], index: 2, kind: input, shape index: {}]   ;;  %s442_s3 = inlined_call_operand.vmem [shape: f32[512,128], index: 3, kind: output, shape index: {}, may-alias: {0,3}]  }
   0x1 LB: > { %s324_s13 = sadd.s32 4294967295, %s351_s12   ;;  %p328_p0 = scmp.ge.s32.totalorder %s351_s12, 1  ;;  %s351_s12 = sphi %s373_s12, %s13_s12  }
   0x2   : > { %p138_p1 = scmp.lt.s32.totalorder %s351_s12, 5 }
   0x4   : > { %p139_p2 = pnand %p328_p0, %p138_p1 }
   0x5   : > { %s329_s14 = sshll.u32 (!%p139_p2), %s324_s13, 4 }
   0x6   : > { %142 = sbr.rel (%p139_p2) target bundleno = 33 (0x21), region = 32  ;;  %p163_p3 = scmp.lt.s32.totalorder (!%p139_p2), %s329_s14, 63 }
   0xb   : > { %s444_s14 = smov (!%p163_p3, %s329_s14), 63  ;;  %v333_v0 = vld [vmem:[%s440_s1] ss:$0 sm:$0xff] }
   0xc   : > { %s330_s15 = sshll.u32 %s444_s14, 3  ;;  %v334_v1 = vld [vmem:[%s441_s2] ss:$0 sm:$0xff] }
   0xd   : > { %s392_s20 = scalar_lea.vmem %s439_s0, %s330_s15  ;;  %s418_s25 = scalar_lea.vmem %s442_s3, %s330_s15 }
   0xe   : > { %v174_v2 = vld [vmem:[%s392_s20] sm:$0xff]  ;;  %v175_v3 = vld [vmem:[%s392_s20 + $0x8] sm:$0xff]  ;;  %v176_v4 = vld [vmem:[%s392_s20 + $0x10] sm:$0xff] }
   0xf   : > { %v177_v5 = vld [vmem:[%s392_s20 + $0x18] sm:$0xff]  ;;  %v178_v6 = vld [vmem:[%s392_s20 + $0x20] sm:$0xff]  ;;  %v179_v7 = vld [vmem:[%s392_s20 + $0x28] sm:$0xff]  ;;  %v197_v8 = vmul.f32 %v333_v0, %v174_v2  ;;  %v198_v9 = vmul.f32 %v333_v0, %v175_v3  ;;  %v199_v10 = vmul.f32 %v333_v0, %v176_v4 }
  0x10   : > { %v180_v11 = vld [vmem:[%s392_s20 + $0x30] sm:$0xff]  ;;  %v181_v12 = vld [vmem:[%s392_s20 + $0x38] sm:$0xff]  ;;  %v182_v13 = vld [vmem:[%s392_s20 + $0x40] sm:$0xff]  ;;  %v200_v14 = vmul.f32 %v333_v0, %v177_v5  ;;  %v201_v15 = vmul.f32 %v333_v0, %v178_v6  ;;  %v202_v16 = vmul.f32 %v333_v0, %v179_v7 }
  0x11   : > { %v183_v17 = vld [vmem:[%s392_s20 + $0x48] sm:$0xff]  ;;  %v184_v18 = vld [vmem:[%s392_s20 + $0x50] sm:$0xff]  ;;  %v185_v19 = vld [vmem:[%s392_s20 + $0x58] sm:$0xff]  ;;  %v203_v20 = vmul.f32 %v333_v0, %v180_v11  ;;  %v204_v21 = vmul.f32 %v333_v0, %v181_v12  ;;  %v205_v22 = vmul.f32 %v333_v0, %v182_v13  ;;  %v220_v23 = vadd.f32 %v334_v1, %v197_v8 }
  0x12   : > { %v186_v24 = vld [vmem:[%s392_s20 + $0x60] sm:$0xff]  ;;  %v187_v25 = vld [vmem:[%s392_s20 + $0x68] sm:$0xff]  ;;  %v188_v26 = vld [vmem:[%s392_s20 + $0x70] sm:$0xff]  ;;  %v206_v27 = vmul.f32 %v333_v0, %v183_v17  ;;  %v207_v28 = vmul.f32 %v333_v0, %v184_v18  ;;  %v208_v29 = vmul.f32 %v333_v0, %v185_v19  ;;  %v221_v30 = vadd.f32 %v334_v1, %v198_v9 }
  0x13   : > { %v189_v31 = vld [vmem:[%s392_s20 + $0x78] sm:$0xff]  ;;  %v209_v32 = vmul.f32 %v333_v0, %v186_v24  ;;  %v210_v33 = vmul.f32 %v333_v0, %v187_v25  ;;  %v211_v34 = vmul.f32 %v333_v0, %v188_v26  ;;  %v222_v35 = vadd.f32 %v334_v1, %v199_v10 }
  0x14   : > { %v212_v36 = vmul.f32 %v333_v0, %v189_v31  ;;  %v223_v37 = vadd.f32 %v334_v1, %v200_v14  ;;  %v224_v38 = vadd.f32 %v334_v1, %v201_v15  ;;  %v225_v39 = vadd.f32 %v334_v1, %v202_v16 }
  0x15   : > { %v226_v40 = vadd.f32 %v334_v1, %v203_v20  ;;  %v227_v41 = vadd.f32 %v334_v1, %v204_v21  ;;  %v228_v42 = vadd.f32 %v334_v1, %v205_v22  ;;  %v229_v43 = vadd.f32 %v334_v1, %v206_v27 }
  0x16   : > { %v230_v44 = vadd.f32 %v334_v1, %v207_v28  ;;  %v231_v45 = vadd.f32 %v334_v1, %v208_v29  ;;  %v232_v46 = vadd.f32 %v334_v1, %v209_v32  ;;  %v233_v47 = vadd.f32 %v334_v1, %v210_v33 }
  0x17   : > { %v234_v48 = vadd.f32 %v334_v1, %v211_v34  ;;  %v235_v49 = vadd.f32 %v334_v1, %v212_v36  ;;  %v236_v50 = vmax.f32 %v220_v23, 0.0  ;;  %v237_v51 = vmax.f32 %v221_v30, 0.0 }
  0x18   : > { %v238_v52 = vmax.f32 %v222_v35, 0.0  ;;  %v239_v53 = vmax.f32 %v223_v37, 0.0  ;;  %v240_v54 = vmax.f32 %v224_v38, 0.0  ;;  %v241_v55 = vmax.f32 %v225_v39, 0.0 }
  0x19   : > { %v242_v56 = vmax.f32 %v226_v40, 0.0  ;;  %v243_v57 = vmax.f32 %v227_v41, 0.0  ;;  %v244_v58 = vmax.f32 %v228_v42, 0.0  ;;  %v245_v59 = vmax.f32 %v229_v43, 0.0  ;;  %252 = vst [vmem:[%s418_s25] sm:$0xff] %v236_v50  ;;  %253 = vst [vmem:[%s418_s25 + $0x8] sm:$0xff] %v237_v51 }
  0x1a   : > { %v246_v60 = vmax.f32 %v230_v44, 0.0  ;;  %v247_v61 = vmax.f32 %v231_v45, 0.0  ;;  %v248_v62 = vmax.f32 %v232_v46, 0.0  ;;  %v249_v63 = vmax.f32 %v233_v47, 0.0  ;;  %254 = vst [vmem:[%s418_s25 + $0x10] sm:$0xff] %v238_v52  ;;  %255 = vst [vmem:[%s418_s25 + $0x18] sm:$0xff] %v239_v53 }
  0x1b   : > { %256 = vst [vmem:[%s418_s25 + $0x20] sm:$0xff] %v240_v54  ;;  %257 = vst [vmem:[%s418_s25 + $0x28] sm:$0xff] %v241_v55  ;;  %v250_v0 = vmax.f32 %v234_v48, 0.0  ;;  %v251_v1 = vmax.f32 %v235_v49, 0.0 }
  0x1c   : > { %258 = vst [vmem:[%s418_s25 + $0x30] sm:$0xff] %v242_v56  ;;  %259 = vst [vmem:[%s418_s25 + $0x38] sm:$0xff] %v243_v57 }
  0x1d   : > { %260 = vst [vmem:[%s418_s25 + $0x40] sm:$0xff] %v244_v58  ;;  %261 = vst [vmem:[%s418_s25 + $0x48] sm:$0xff] %v245_v59 }
  0x1e   : > { %262 = vst [vmem:[%s418_s25 + $0x50] sm:$0xff] %v246_v60  ;;  %263 = vst [vmem:[%s418_s25 + $0x58] sm:$0xff] %v247_v61 }
  0x1f   : > { %264 = vst [vmem:[%s418_s25 + $0x60] sm:$0xff] %v248_v62  ;;  %265 = vst [vmem:[%s418_s25 + $0x68] sm:$0xff] %v249_v63 }
  0x20   : > { %266 = vst [vmem:[%s418_s25 + $0x70] sm:$0xff] %v250_v0  ;;  %267 = vst [vmem:[%s418_s25 + $0x78] sm:$0xff] %v251_v1 }
  0x21 PF: > { %s13_s12 = sadd.s32 1, %s351_s12  }
  0x22   : > { %p10_p4 = scmp.ge.s32.totalorder %s13_s12, 6  }
  0x24   :  { %12 = sbr.rel (!%p10_p4) target bundleno = 1 (0x1), region = 62 }

// kernel: convlayer_forward.2
= control target key start
LH: loop header
LB: loop body
LE: loop exit
PB: predicated region body
PF: predicated region fallthrough
CT: control target
= control target key end

     0   :  { %s766_s15 = smov 0   ;;  %s868_s0 = inlined_call_operand.vmem [shape: f32[512,40], index: 0, kind: input, shape index: {}]   ;;  %s869_s1 = inlined_call_operand.vmem [shape: f32[40,128], index: 1, kind: input, shape index: {}]   ;;  %s870_s2 = inlined_call_operand.vmem [shape: f32[512,128], index: 2, kind: output, shape index: {0}]   ;;  %s871_s3 = inlined_call_operand.vmem [shape: f32[32,128], index: 3, kind: output, shape index: {1}]   ;;  %s872_s4 = inlined_call_operand.vmem [shape: f32[32,128], index: 4, kind: output, shape index: {2}]  }
   0x1 LB: > { %s772_s16 = sadd.s32 4294967295, %s739_s15   ;;  %p635_p0 = scmp.ge.s32.totalorder %s739_s15, 1  ;;  %s739_s15 = sphi %s766_s15, %s15_s15  }
   0x2   : > { %p168_p1 = scmp.lt.s32.totalorder %s739_s15, 5 }
   0x4   : > { %p169_p2 = pnand %p635_p0, %p168_p1 }
   0x5   : > { %s636_s21 = sshll.u32 (!%p169_p2), %s772_s16, 4  ;;  %p214_p4 = scmp.lt.s32.totalorder (!%p169_p2), %s772_s16, 3 }
   0x6   : > { %172 = sbr.rel (%p169_p2) target bundleno = 264 (0x108), region = 28  ;;  %p203_p3 = scmp.lt.s32.totalorder (!%p169_p2), %s636_s21, 63 }
   0xb   : > { %v242_v0 = vld [vmem:[%s869_s1 + $0x20] sm:$0xff]  ;;  %v241_v1 = vld [vmem:[%s869_s1 + $0x18] sm:$0xff]  ;;  %v240_v2 = vld [vmem:[%s869_s1 + $0x10] sm:$0xff]  ;;  %s874_s21 = smov (!%p203_p3, %s636_s21), 63  ;;  %vm243_vm0 = vcmask 326656   ;;  %s876_s16 = smov (!%p214_p4, %s772_s16), 3 }
   0xc   : > { %681 = vmatprep.subr.mxu0 %v242_v0  ;;  %715 = vmatprep.subr.mxu1 %v242_v0  ;;  %v239_v3 = vld [vmem:[%s869_s1 + $0x8] sm:$0xff]  ;;  %s637_s26 = sshll.u32 %s874_s21, 3  ;;  %v238_v4 = vld [vmem:[%s869_s1] sm:$0xff]  ;;  %s640_s9 = sshll.u32 %s876_s16, 3 }
   0xd   : > { %682 = vmatpush3.msra.mxu0 %v242_v0  ;;  %720 = vmatpush3.msra.mxu1 %v242_v0  ;;  %s800_s5 = scalar_lea.vmem %s868_s0, %s637_s26  ;;  %s839_s8 = scalar_lea.vmem %s870_s2, %s637_s26 }
   0xe   : > { %683 = vmatprep.subr.mxu0 %v241_v1  ;;  %716 = vmatprep.subr.mxu1 %v241_v1  ;;  %v222_v5 = vld [vmem:[%s800_s5] sm:$0xff]  ;;  %v223_v6 = vld [vmem:[%s800_s5 + $0x8] sm:$0xff]  ;;  %v224_v7 = vld [vmem:[%s800_s5 + $0x10] sm:$0xff]  ;;  %s217_s12 = scalar_lea.vmem %s871_s3, %s640_s9  ;;  %s221_s17 = scalar_lea.vmem %s872_s4, %s640_s9 }
   0xf   : > { %684 = vmatpush3.msra.mxu0 %v241_v1  ;;  %721 = vmatpush3.msra.mxu1 %v241_v1  ;;  %v230_v8 = vld [vmem:[%s800_s5 + $0x40] sm:$0xff]  ;;  %v231_v9 = vld [vmem:[%s800_s5 + $0x48] sm:$0xff]  ;;  %v232_v10 = vld [vmem:[%s800_s5 + $0x50] sm:$0xff] }
  0x10   : > { %685 = vmatprep.subr.mxu0 %v240_v2  ;;  %717 = vmatprep.subr.mxu1 %v240_v2  ;;  %v225_v11 = vld [vmem:[%s800_s5 + $0x18] sm:$0xff]  ;;  %v226_v12 = vld [vmem:[%s800_s5 + $0x20] sm:$0xff]  ;;  %v227_v15 = vld [vmem:[%s800_s5 + $0x28] sm:$0xff] }
  0x11   : > { %686 = vmatpush3.msra.mxu0 %v240_v2  ;;  %722 = vmatpush3.msra.mxu1 %v240_v2  ;;  %v233_v13 = vld [vmem:[%s800_s5 + $0x58] sm:$0xff]  ;;  %v234_v14 = vld [vmem:[%s800_s5 + $0x60] sm:$0xff]  ;;  %v228_v16 = vld [vmem:[%s800_s5 + $0x30] sm:$0xff] }
  0x12   : > { %687 = vmatprep.subr.mxu0 %v239_v3  ;;  %718 = vmatprep.subr.mxu1 %v239_v3  ;;  %v235_v17 = vld [vmem:[%s800_s5 + $0x68] sm:$0xff]  ;;  %v236_v18 = vld [vmem:[%s800_s5 + $0x70] sm:$0xff]  ;;  %v229_v19 = vld [vmem:[%s800_s5 + $0x38] sm:$0xff] }
  0x13   : > { %688 = vmatpush3.msra.mxu0 %v239_v3  ;;  %691 = vmatprep.mubr.msk.f32.mxu0 %vm243_vm0, %v222_v5  ;;  %v237_v20 = vld [vmem:[%s800_s5 + $0x78] sm:$0xff] }
  0x14   : > { %689 = vmatprep.subr.mxu0 %v238_v4  ;;  %723 = vmatpush3.msra.mxu1 %v239_v3 }
  0x15   : > { %690 = vmatpush3.msra.mxu0 %v238_v4  ;;  %719 = vmatprep.subr.mxu1 %v238_v4 }
  0x16   : > { %692 = vmatmul.mubr.msk.f32.vlgmr.msra.gmra.mxu0 %vm243_vm0, %v223_v6  ;;  %724 = vmatpush3.msra.mxu1 %v238_v4 }
  0x17   : > { %694 = vmatprep.mubr.msk.f32.mxu0 %vm243_vm0, %v224_v7  ;;  %703 = vmatprep.mubr.msk.f32.mxu1 %vm243_vm0, %v230_v8 }
  0x18   : > { %704 = vmatmul.mubr.msk.f32.vlgmr.msra.gmra.mxu1 %vm243_vm0, %v231_v9 }
  0x19   : > { %706 = vmatprep.mubr.msk.f32.mxu1 %vm243_vm0, %v232_v10 }
  0x1a   : > { %695 = vmatmul.mubr.msk.f32.gmra.mxu0 %vm243_vm0, %v225_v11 }
  0x1b   : > { %697 = vmatprep.mubr.msk.f32.mxu0 %vm243_vm0, %v226_v12 }
  0x1c   : > { %707 = vmatmul.mubr.msk.f32.gmra.mxu1 %vm243_vm0, %v233_v13 }
  0x1d   : > { %709 = vmatprep.mubr.msk.f32.mxu1 %vm243_vm0, %v234_v14 }
  0x1e   : > { %698 = vmatmul.mubr.msk.f32.gmra.mxu0 %vm243_vm0, %v227_v15 }
  0x1f   : > { %700 = vmatprep.mubr.msk.f32.mxu0 %vm243_vm0, %v228_v16 }
  0x20   : > { %710 = vmatmul.mubr.msk.f32.gmra.mxu1 %vm243_vm0, %v235_v17 }
  0x21   : > { %712 = vmatprep.mubr.msk.f32.mxu1 %vm243_vm0, %v236_v18 }
  0x22   : > { %701 = vmatmul.mubr.msk.f32.gmra.mxu0 %vm243_vm0, %v229_v19 }
  0x24   : > { %713 = vmatmul.mubr.msk.f32.gmra.mxu1 %vm243_vm0, %v237_v20 }
  0xd6   : > { %v693_v21 = vpop.f32.mrf.mxu0 }
  0xd7   : > { %438 = vst [vmem:[%s839_s8 + $0x8] sm:$0xff] %v693_v21  ;;  %v475_v27 = vmul.f32 %v693_v21, %v693_v21 }
  0xd8   : > { %v358_v22 = vpop.f32.mrf.mxu0  ;;  %v705_v23 = vpop.f32.mrf.mxu1 }
  0xd9   : > { %437 = vst [vmem:[%s839_s8] sm:$0xff] %v358_v22  ;;  %v474_v24 = vmul.f32 %v358_v22, %v358_v22  ;;  %446 = vst [vmem:[%s839_s8 + $0x48] sm:$0xff] %v705_v23  ;;  %v453_v28 = vadd.f32 %v693_v21, %v358_v22  ;;  %v483_v61 = vmul.f32 %v705_v23, %v705_v23 }
  0xda   : > { %v696_v25 = vpop.f32.mrf.mxu0  ;;  %v398_v26 = vpop.f32.mrf.mxu1 }
  0xdb   : > { %440 = vst [vmem:[%s839_s8 + $0x18] sm:$0xff] %v696_v25  ;;  %445 = vst [vmem:[%s839_s8 + $0x40] sm:$0xff] %v398_v26  ;;  %v490_v31 = vadd.f32 %v475_v27, %v474_v24  ;;  %v477_v36 = vmul.f32 %v696_v25, %v696_v25  ;;  %v482_v60 = vmul.f32 %v398_v26, %v398_v26 }
  0xdc   : > { %v368_v29 = vpop.f32.mrf.mxu0  ;;  %v708_v30 = vpop.f32.mrf.mxu1 }
  0xdd   : > { %439 = vst [vmem:[%s839_s8 + $0x10] sm:$0xff] %v368_v29  ;;  %v454_v32 = vadd.f32 %v453_v28, %v368_v29  ;;  %v476_v33 = vmul.f32 %v368_v29, %v368_v29  ;;  %448 = vst [vmem:[%s839_s8 + $0x58] sm:$0xff] %v708_v30  ;;  %v485_v3 = vmul.f32 %v708_v30, %v708_v30 }
  0xde   : > { %v699_v34 = vpop.f32.mrf.mxu0  ;;  %v408_v35 = vpop.f32.mrf.mxu1 }
  0xdf   : > { %v491_v37 = vadd.f32 %v490_v31, %v476_v33  ;;  %442 = vst [vmem:[%s839_s8 + $0x28] sm:$0xff] %v699_v34  ;;  %v455_v38 = vadd.f32 %v696_v25, %v454_v32  ;;  %447 = vst [vmem:[%s839_s8 + $0x50] sm:$0xff] %v408_v35  ;;  %v479_v46 = vmul.f32 %v699_v34, %v699_v34 }
  0xe0   : > { %v378_v39 = vpop.f32.mrf.mxu0  ;;  %v711_v40 = vpop.f32.mrf.mxu1  ;;  %v484_v1 = vmul.f32 %v408_v35, %v408_v35 }
  0xe1   : > { %441 = vst [vmem:[%s839_s8 + $0x20] sm:$0xff] %v378_v39  ;;  %v456_v41 = vadd.f32 %v455_v38, %v378_v39  ;;  %v478_v42 = vmul.f32 %v378_v39, %v378_v39  ;;  %v492_v43 = vadd.f32 %v491_v37, %v477_v36  ;;  %450 = vst [vmem:[%s839_s8 + $0x68] sm:$0xff] %v711_v40 }
  0xe2   : > { %v702_v44 = vpop.f32.mrf.mxu0  ;;  %v418_v45 = vpop.f32.mrf.mxu1  ;;  %v487_v9 = vmul.f32 %v711_v40, %v711_v40 }
  0xe3   : > { %v493_v47 = vadd.f32 %v492_v43, %v478_v42  ;;  %444 = vst [vmem:[%s839_s8 + $0x38] sm:$0xff] %v702_v44  ;;  %v457_v48 = vadd.f32 %v699_v34, %v456_v41  ;;  %449 = vst [vmem:[%s839_s8 + $0x60] sm:$0xff] %v418_v45  ;;  %v481_v55 = vmul.f32 %v702_v44, %v702_v44 }
  0xe4   : > { %v388_v49 = vpop.f32.mrf.mxu0  ;;  %v714_v50 = vpop.f32.mrf.mxu1  ;;  %v486_v7 = vmul.f32 %v418_v45, %v418_v45 }
  0xe5   : > { %443 = vst [vmem:[%s839_s8 + $0x30] sm:$0xff] %v388_v49  ;;  %v458_v51 = vadd.f32 %v457_v48, %v388_v49  ;;  %v480_v52 = vmul.f32 %v388_v49, %v388_v49  ;;  %v494_v53 = vadd.f32 %v493_v47, %v479_v46  ;;  %452 = vst [vmem:[%s839_s8 + $0x78] sm:$0xff] %v714_v50 }
  0xe6   : > { %v428_v54 = vpop.f32.mrf.mxu1  ;;  %v489_v15 = vmul.f32 %v714_v50, %v714_v50 }
  0xe7   : > { %v459_v56 = vadd.f32 %v702_v44, %v458_v51  ;;  %v495_v57 = vadd.f32 %v494_v53, %v480_v52  ;;  %451 = vst [vmem:[%s839_s8 + $0x70] sm:$0xff] %v428_v54  ;;  %v488_v13 = vmul.f32 %v428_v54, %v428_v54 }
  0xe9   : > { %v496_v58 = vadd.f32 %v495_v57, %v481_v55  ;;  %v460_v59 = vadd.f32 %v459_v56, %v398_v26 }
  0xeb   : > { %v497_v62 = vadd.f32 %v496_v58, %v482_v60  ;;  %v461_v63 = vadd.f32 %v705_v23, %v460_v59 }
  0xed   : > { %v462_v0 = vadd.f32 %v461_v63, %v408_v35  ;;  %v498_v2 = vadd.f32 %v497_v62, %v483_v61 }
  0xef   : > { %v499_v4 = vadd.f32 %v498_v2, %v484_v1  ;;  %v463_v5 = vadd.f32 %v708_v30, %v462_v0 }
  0xf1   : > { %v464_v6 = vadd.f32 %v463_v5, %v418_v45  ;;  %v500_v8 = vadd.f32 %v499_v4, %v485_v3 }
  0xf3   : > { %v501_v10 = vadd.f32 %v500_v8, %v486_v7  ;;  %v465_v11 = vadd.f32 %v711_v40, %v464_v6 }
  0xf5   : > { %v466_v12 = vadd.f32 %v465_v11, %v428_v54  ;;  %v502_v14 = vadd.f32 %v501_v10, %v487_v9 }
  0xf7   : > { %v467_v16 = vadd.f32 %v714_v50, %v466_v12  ;;  %v503_v17 = vadd.f32 %v502_v14, %v488_v13 }
  0xf9   : > { %v468_v18 = vrot.slane %v467_v16, 4  ;;  %v504_v19 = vadd.f32 %v503_v17, %v489_v15 }
  0xfb   : > { %v469_v20 = vadd.f32 %v468_v18, %v467_v16  ;;  %v505_v21 = vrot.slane %v504_v19, 4 }
  0xfd   : > { %v470_v22 = vrot.slane %v469_v20, 2  ;;  %v506_v23 = vadd.f32 %v505_v21, %v504_v19 }
  0xff   : > { %v471_v24 = vadd.f32 %v470_v22, %v469_v20  ;;  %v507_v25 = vrot.slane %v506_v23, 2 }
 0x101   : > { %v472_v26 = vrot.slane %v471_v24, 1  ;;  %v508_v27 = vadd.f32 %v507_v25, %v506_v23 }
 0x103   : > { %v473_v28 = vadd.f32 %v472_v26, %v471_v24  ;;  %v509_v29 = vrot.slane %v508_v27, 1 }
 0x105   : > { %v510_v30 = vadd.f32 %v509_v29, %v508_v27  ;;  %511 = vst [vmem:[%s217_s12] sm:$0xff] %v473_v28 }
 0x107   : > { %512 = vst [vmem:[%s221_s17] sm:$0xff] %v510_v30 }
 0x108 PF: > { %s15_s15 = sadd.s32 1, %s739_s15  }
 0x109   : > { %p12_p5 = scmp.ge.s32.totalorder %s15_s15, 6  }
 0x10b   :  { %14 = sbr.rel (!%p12_p5) target bundleno = 1 (0x1), region = 82 }

</bundles_post_ra>
